<compile_context>
chip_gen: v7x
topology: tpu7x:2x2x1
jax: 0.10.0
libtpu: 0.0.40
codegen_flags: <defaults>
</compile_context>

<pallas_src>
import functools

import numpy as np
import jax
import jax.numpy as jnp
from jax.experimental import pallas as pl
from jax.experimental.pallas import tpu as pltpu

EPS = 1e-6
LEAKY_SLOPE = 0.01  # F.leaky_relu default negative_slope


def _gumbel_matrix_kernel(n_layers, inv_tau, hard, training, *refs):
    refs = list(refs)
    f_ref = refs.pop(0)                                  # (TB, feature_dim)
    a_ref = refs.pop(0)                                  # (TB, action_dim)
    u_ref = refs.pop(0) if training else None            # (TB, F*final_dim)
    w0f_ref = refs.pop(0)                                # (feature_dim, F*out0)
    w0a_ref = refs.pop(0)                                # (action_dim,  F*out0)
    b0_ref = refs.pop(0)                                 # (1, F*out0)
    wb_refs = refs[:2 * (n_layers - 1)]                  # block-diag W / bias pairs
    sample_ref, prob_ref = refs[2 * (n_layers - 1):]     # (TB, F*final_dim) each

    # Layer 0: dense MXU matmuls (x split into feature / action parts).
    h = (jnp.dot(f_ref[...], w0f_ref[...], preferred_element_type=jnp.float32)
         + jnp.dot(a_ref[...], w0a_ref[...], preferred_element_type=jnp.float32)
         + b0_ref[...])
    if n_layers > 1:
        h = jnp.where(h > 0, h, LEAKY_SLOPE * h)          # leaky_relu

    # Deeper layers: block-diagonal matmul keeps the per-feature structure while
    # staying lane-dense and on the MXU.
    for l in range(n_layers - 1):
        w = wb_refs[2 * l][...]                           # (F*in, F*out)
        b = wb_refs[2 * l + 1][...]                       # (1, F*out)
        h = jnp.dot(h, w, preferred_element_type=jnp.float32) + b
        if l < n_layers - 2:
            h = jnp.where(h > 0, h, LEAKY_SLOPE * h)

    log_alpha = h                                         # (TB, F*final_dim)
    prob = jax.nn.sigmoid(log_alpha)
    prob_ref[...] = prob

    if training:
        # gumbel_sigmoid: logistic noise = log(u) - log(1-u), u ~ Uniform clipped to
        # [EPS, 1-EPS] (matches the torch reference).
        u = jnp.clip(u_ref[...], EPS, 1.0 - EPS)
        noise = jnp.log(u) - jnp.log(1.0 - u)
        logits = log_alpha + noise
        if hard:
            # tau > 0  =>  sigmoid(logits / tau) > 0.5  <=>  logits > 0
            # (straight-through forward value; saves one sigmoid on the EUP)
            sample_ref[...] = (logits > 0.0).astype(jnp.float32)
        else:
            sample_ref[...] = jax.nn.sigmoid(logits * inv_tau)
    else:
        sample_ref[...] = prob


def conditional_gumbel_matrix_forward(feature, action, weights, biases,
                                      uniform=None, tau=1.0, drawhard=True,
                                      training=True, batch_tile=256):
    """Pallas implementation of ConditionalGumbelMatrix.forward -> (sample, prob).

    feature: (bs, feature_dim), action: (bs, action_dim)
    weights[l]: (feature_dim, out_l, in_l), biases[l]: (feature_dim, out_l)
    uniform: (bs, feature_dim, final_dim) U[0,1) noise, required when training.
    """
    feature = jnp.asarray(feature, jnp.float32)
    action = jnp.asarray(action, jnp.float32)
    bs, fdim = feature.shape
    adim = action.shape[1]
    F = weights[0].shape[0]
    final_dim = weights[-1].shape[1]
    n_layers = len(weights)
    lane_out = F * final_dim

    # ---- one-time weight re-layout (wrapper-side XLA, lane-dense operands) ----
    w0 = jnp.asarray(weights[0], jnp.float32)             # (F, out0, in0)
    out0 = w0.shape[1]
    w0_flat = jnp.transpose(w0, (2, 0, 1)).reshape(fdim + adim, F * out0)
    w0f, w0a = w0_flat[:fdim], w0_flat[fdim:]
    b0 = jnp.asarray(biases[0], jnp.float32).reshape(1, F * out0)

    eye = jnp.eye(F, dtype=jnp.float32)
    deep = []
    for w, b in zip(weights[1:], biases[1:]):
        w = jnp.asarray(w, jnp.float32)                    # (F, out, in)
        out_d, in_d = w.shape[1], w.shape[2]
        # block-diag: W[(f,i),(g,o)] = delta(f,g) * w[f,o,i]
        w_bd = jnp.einsum('foi,fg->figo', w, eye).reshape(F * in_d, F * out_d)
        deep.append(w_bd)
        deep.append(jnp.asarray(b, jnp.float32).reshape(1, F * out_d))

    # ---- batch tiling (grid + padding) ----
    tb = bs if bs < batch_tile else batch_tile
    n_blocks = pl.cdiv(bs, tb)
    padded = n_blocks * tb

    inputs = [feature, action]
    if training:
        if uniform is None:
            raise ValueError("training=True requires a `uniform` noise input")
        inputs.append(jnp.asarray(uniform, jnp.float32).reshape(bs, lane_out))
    if padded != bs:
        inputs = [jnp.pad(x, ((0, padded - bs), (0, 0))) for x in inputs]
    inputs += [w0f, w0a, b0] + deep

    def batched(width):
        return pl.BlockSpec((tb, width), lambda i: (i, 0))

    def resident(arr):
        return pl.BlockSpec(arr.shape, lambda i: (0, 0))

    in_specs = [batched(fdim), batched(adim)]
    if training:
        in_specs.append(batched(lane_out))
    in_specs += [resident(w0f), resident(w0a), resident(b0)]
    in_specs += [resident(arr) for arr in deep]

    out_specs = (batched(lane_out), batched(lane_out))
    out_shape = (jax.ShapeDtypeStruct((padded, lane_out), jnp.float32),
                 jax.ShapeDtypeStruct((padded, lane_out), jnp.float32))

    kernel = functools.partial(_gumbel_matrix_kernel, n_layers, float(1.0 / tau),
                               bool(drawhard), bool(training))

    sample, prob = pl.pallas_call(
        kernel,
        grid=(n_blocks,),
        in_specs=in_specs,
        out_specs=out_specs,
        out_shape=out_shape,
        compiler_params=pltpu.CompilerParams(
            dimension_semantics=("parallel",)),
    )(*inputs)

    sample = sample[:bs].reshape(bs, F, final_dim)
    prob = prob[:bs].reshape(bs, F, final_dim)
    return sample, prob


def init_params(key, feature_dim, action_dim, fc_dims, final_dim):
    """Deterministic init mirroring reset_params (kaiming_uniform(a=sqrt(5)) + bias bounds)."""
    weights, biases = [], []
    in_dim = feature_dim + action_dim
    out_dims = fc_dims + [final_dim]
    bias_fan_ins = [feature_dim + action_dim] + fc_dims
    for out_dim, b_fan in zip(out_dims, bias_fan_ins):
        key, kw, kb = jax.random.split(key, 3)
        # kaiming_uniform_(a=sqrt(5)) on a (F, out, in) tensor -> bound = 1/sqrt(out*in)
        w_bound = 1.0 / np.sqrt(out_dim * in_dim)
        w = jax.random.uniform(kw, (feature_dim, out_dim, in_dim), jnp.float32,
                               -w_bound, w_bound)
        b_bound = 1.0 / np.sqrt(b_fan)
        b = jax.random.uniform(kb, (feature_dim, out_dim), jnp.float32,
                               -b_bound, b_bound)
        weights.append(w)
        biases.append(b)
        in_dim = out_dim
    return weights, biases


def _reference_log_alpha(feature, action, weights, biases):
    """Pure-JAX reference of forward_fcs (intended semantics)."""
    out = jnp.concatenate([feature, action], axis=-1)
    for i, (w, b) in enumerate(zip(weights, biases)):
        if i == 0:
            out = jnp.sum(w[None, :, :, :] * out[:, None, None, :], axis=-1) + b[None]
        else:
            out = jnp.sum(w[None, :, :, :] * out[:, :, None, :], axis=-1) + b[None]
        if i < len(weights) - 1:
            out = jnp.where(out > 0, out, LEAKY_SLOPE * out)
    return out


if __name__ == "__main__":
    feature_dim, action_dim, final_dim = 8, 4, 16
    fc_dims = [32, 32]
    bs = 8

    key = jax.random.PRNGKey(0)
    kf, ka, kp, ku = jax.random.split(key, 4)
    feature = jax.random.normal(kf, (bs, feature_dim), jnp.float32)
    action = jax.random.normal(ka, (bs, action_dim), jnp.float32)
    weights, biases = init_params(kp, feature_dim, action_dim, fc_dims, final_dim)
    uniform = jax.random.uniform(ku, (bs, feature_dim, final_dim), jnp.float32)

    # training / hard path
    sample, prob = conditional_gumbel_matrix_forward(
        feature, action, weights, biases, uniform=uniform,
        tau=1.0, drawhard=True, training=True)
    jax.block_until_ready((sample, prob))

    assert sample.shape == (bs, feature_dim, final_dim)
    assert prob.shape == (bs, feature_dim, final_dim)

    log_alpha_ref = _reference_log_alpha(feature, action, weights, biases)
    prob_ref = jax.nn.sigmoid(log_alpha_ref)
    assert jnp.allclose(prob, prob_ref, atol=1e-5, rtol=1e-5), "prob mismatch vs reference"
    # drawhard=True -> sample values are exactly 0 or 1
    assert bool(jnp.all((sample == 0.0) | (sample == 1.0)))

    # hard sample matches the reference gumbel-sigmoid threshold with the same noise
    u_c = jnp.clip(uniform, EPS, 1.0 - EPS)
    noise = jnp.log(u_c) - jnp.log(1.0 - u_c)
    expected_hard = (log_alpha_ref + noise > 0.0).astype(jnp.float32)
    agree = float(jnp.mean((sample == expected_hard).astype(jnp.float32)))
    assert agree > 0.99, f"hard sample agreement too low: {agree}"

    # eval path: sample == prob == sigmoid(log_alpha)
    sample_eval, prob_eval = conditional_gumbel_matrix_forward(
        feature, action, weights, biases, uniform=None,
        tau=1.0, drawhard=True, training=False)
    jax.block_until_ready((sample_eval, prob_eval))
    assert jnp.allclose(sample_eval, prob_eval)
    assert jnp.allclose(prob_eval, prob_ref, atol=1e-5, rtol=1e-5)

    # exercise the batch grid (>1 block, with padding) and resident weights
    bs2 = 10
    kf2, ka2, ku2 = jax.random.split(jax.random.PRNGKey(1), 3)
    feature2 = jax.random.normal(kf2, (bs2, feature_dim), jnp.float32)
    action2 = jax.random.normal(ka2, (bs2, action_dim), jnp.float32)
    uniform2 = jax.random.uniform(ku2, (bs2, feature_dim, final_dim), jnp.float32)
    sample2, prob2 = conditional_gumbel_matrix_forward(
        feature2, action2, weights, biases, uniform=uniform2,
        tau=1.0, drawhard=True, training=True, batch_tile=8)
    jax.block_until_ready((sample2, prob2))
    prob2_ref = jax.nn.sigmoid(_reference_log_alpha(feature2, action2, weights, biases))
    assert jnp.allclose(prob2, prob2_ref, atol=1e-5, rtol=1e-5), "gridded prob mismatch"
    assert bool(jnp.all((sample2 == 0.0) | (sample2 == 1.0)))

    print("KERNEL_OK")
</pallas_src>

<mosaic_0001>
module attributes {stable_mosaic.version = 11 : i64} {
  func.func @_gumbel_matrix_kernel(%arg0: i32, %arg1: memref<8x8xf32, #tpu.memory_space<vmem>>, %arg2: memref<8x4xf32, #tpu.memory_space<vmem>>, %arg3: memref<8x128xf32, #tpu.memory_space<vmem>>, %arg4: memref<8x256xf32, #tpu.memory_space<vmem>>, %arg5: memref<4x256xf32, #tpu.memory_space<vmem>>, %arg6: memref<1x256xf32, #tpu.memory_space<vmem>>, %arg7: memref<256x256xf32, #tpu.memory_space<vmem>>, %arg8: memref<1x256xf32, #tpu.memory_space<vmem>>, %arg9: memref<256x128xf32, #tpu.memory_space<vmem>>, %arg10: memref<1x128xf32, #tpu.memory_space<vmem>>, %arg11: memref<8x128xf32, #tpu.memory_space<vmem>>, %arg12: memref<8x128xf32, #tpu.memory_space<vmem>>) attributes {dimension_semantics = [#tpu.dimension_semantics<parallel>], iteration_bounds = array<i64: 1>, scalar_prefetch = 0 : i64, scratch_operands = 0 : i64, tpu.core_type = #tpu.core_type<tc>, window_params = [{transform_indices = @transform_0, window_bounds = array<i64: 8, 8>}, {transform_indices = @transform_1, window_bounds = array<i64: 8, 4>}, {transform_indices = @transform_2, window_bounds = array<i64: 8, 128>}, {pipeline_mode = #tpu.pipeline_mode<synchronous>, transform_indices = @transform_3, window_bounds = array<i64: 8, 256>}, {pipeline_mode = #tpu.pipeline_mode<synchronous>, transform_indices = @transform_4, window_bounds = array<i64: 4, 256>}, {pipeline_mode = #tpu.pipeline_mode<synchronous>, transform_indices = @transform_5, window_bounds = array<i64: 1, 256>}, {pipeline_mode = #tpu.pipeline_mode<synchronous>, transform_indices = @transform_6, window_bounds = array<i64: 256, 256>}, {pipeline_mode = #tpu.pipeline_mode<synchronous>, transform_indices = @transform_7, window_bounds = array<i64: 1, 256>}, {pipeline_mode = #tpu.pipeline_mode<synchronous>, transform_indices = @transform_8, window_bounds = array<i64: 256, 128>}, {pipeline_mode = #tpu.pipeline_mode<synchronous>, transform_indices = @transform_9, window_bounds = array<i64: 1, 128>}, {transform_indices = @transform_10, window_bounds = array<i64: 8, 128>}, {transform_indices = @transform_11, window_bounds = array<i64: 8, 128>}]} {
    %c0 = arith.constant 0 : index
    %c0_0 = arith.constant 0 : index
    %0 = vector.load %arg1[%c0, %c0_0] : memref<8x8xf32, #tpu.memory_space<vmem>>, vector<8x8xf32>
    %c0_1 = arith.constant 0 : index
    %c0_2 = arith.constant 0 : index
    %1 = vector.load %arg4[%c0_1, %c0_2] : memref<8x256xf32, #tpu.memory_space<vmem>>, vector<8x256xf32>
    %cst = arith.constant dense<0.000000e+00> : vector<8x256xf32>
    %2 = tpu.matmul %0, %1, %cst {dimension_numbers = #tpu.dot_dimension_numbers<[1], [0], [0], [1], [0, 0, 1, 1], [], []>} : vector<8x8xf32>, vector<8x256xf32>, vector<8x256xf32> -> vector<8x256xf32>
    %c0_3 = arith.constant 0 : index
    %c0_4 = arith.constant 0 : index
    %3 = vector.load %arg2[%c0_3, %c0_4] : memref<8x4xf32, #tpu.memory_space<vmem>>, vector<8x4xf32>
    %c0_5 = arith.constant 0 : index
    %c0_6 = arith.constant 0 : index
    %4 = vector.load %arg5[%c0_5, %c0_6] : memref<4x256xf32, #tpu.memory_space<vmem>>, vector<4x256xf32>
    %cst_7 = arith.constant dense<0.000000e+00> : vector<8x256xf32>
    %5 = tpu.matmul %3, %4, %cst_7 {dimension_numbers = #tpu.dot_dimension_numbers<[1], [0], [0], [1], [0, 0, 1, 1], [], []>} : vector<8x4xf32>, vector<4x256xf32>, vector<8x256xf32> -> vector<8x256xf32>
    %6 = arith.addf %2, %5 : vector<8x256xf32>
    %c0_8 = arith.constant 0 : index
    %c0_9 = arith.constant 0 : index
    %7 = vector.load %arg6[%c0_8, %c0_9] : memref<1x256xf32, #tpu.memory_space<vmem>>, vector<1x256xf32>
    %8 = vector.broadcast %7 : vector<1x256xf32> to vector<8x256xf32>
    %9 = arith.addf %6, %8 : vector<8x256xf32>
    %cst_10 = arith.constant 0.000000e+00 : f32
    %10 = vector.broadcast %cst_10 : f32 to vector<8x256xf32>
    %11 = arith.cmpf ogt, %9, %10 : vector<8x256xf32>
    %cst_11 = arith.constant 0.00999999977 : f32
    %12 = vector.broadcast %cst_11 : f32 to vector<8x256xf32>
    %13 = arith.mulf %12, %9 : vector<8x256xf32>
    %14 = arith.select %11, %9, %13 : vector<8x256xi1>, vector<8x256xf32>
    %c0_12 = arith.constant 0 : index
    %c0_13 = arith.constant 0 : index
    %15 = vector.load %arg7[%c0_12, %c0_13] : memref<256x256xf32, #tpu.memory_space<vmem>>, vector<256x256xf32>
    %c0_14 = arith.constant 0 : index
    %c0_15 = arith.constant 0 : index
    %16 = vector.load %arg8[%c0_14, %c0_15] : memref<1x256xf32, #tpu.memory_space<vmem>>, vector<1x256xf32>
    %cst_16 = arith.constant dense<0.000000e+00> : vector<8x256xf32>
    %17 = tpu.matmul %14, %15, %cst_16 {dimension_numbers = #tpu.dot_dimension_numbers<[1], [0], [0], [1], [0, 0, 1, 1], [], []>} : vector<8x256xf32>, vector<256x256xf32>, vector<8x256xf32> -> vector<8x256xf32>
    %18 = vector.broadcast %16 : vector<1x256xf32> to vector<8x256xf32>
    %19 = arith.addf %17, %18 : vector<8x256xf32>
    %cst_17 = arith.constant 0.000000e+00 : f32
    %20 = vector.broadcast %cst_17 : f32 to vector<8x256xf32>
    %21 = arith.cmpf ogt, %19, %20 : vector<8x256xf32>
    %cst_18 = arith.constant 0.00999999977 : f32
    %22 = vector.broadcast %cst_18 : f32 to vector<8x256xf32>
    %23 = arith.mulf %22, %19 : vector<8x256xf32>
    %24 = arith.select %21, %19, %23 : vector<8x256xi1>, vector<8x256xf32>
    %c0_19 = arith.constant 0 : index
    %c0_20 = arith.constant 0 : index
    %25 = vector.load %arg9[%c0_19, %c0_20] : memref<256x128xf32, #tpu.memory_space<vmem>>, vector<256x128xf32>
    %c0_21 = arith.constant 0 : index
    %c0_22 = arith.constant 0 : index
    %26 = vector.load %arg10[%c0_21, %c0_22] : memref<1x128xf32, #tpu.memory_space<vmem>>, vector<1x128xf32>
    %cst_23 = arith.constant dense<0.000000e+00> : vector<8x128xf32>
    %27 = tpu.matmul %24, %25, %cst_23 {dimension_numbers = #tpu.dot_dimension_numbers<[1], [0], [0], [1], [0, 0, 1, 1], [], []>} : vector<8x256xf32>, vector<256x128xf32>, vector<8x128xf32> -> vector<8x128xf32>
    %28 = vector.broadcast %26 : vector<1x128xf32> to vector<8x128xf32>
    %29 = arith.addf %27, %28 : vector<8x128xf32>
    %30 = arith.negf %29 : vector<8x128xf32>
    %31 = math.exp %30 : vector<8x128xf32>
    %cst_24 = arith.constant 1.000000e+00 : f32
    %32 = vector.broadcast %cst_24 : f32 to vector<8x128xf32>
    %33 = arith.addf %32, %31 : vector<8x128xf32>
    %34 = arith.divf %32, %33 : vector<8x128xf32>
    %c0_25 = arith.constant 0 : index
    %c0_26 = arith.constant 0 : index
    %35 = vector.load %arg12[%c0_25, %c0_26] : memref<8x128xf32, #tpu.memory_space<vmem>>, vector<8x128xf32>
    tpu.vector_store %arg12[%c0_25, %c0_26], %34 {strides = array<i32>} : memref<8x128xf32, #tpu.memory_space<vmem>>, vector<8x128xf32>,
    %c0_27 = arith.constant 0 : index
    %c0_28 = arith.constant 0 : index
    %36 = vector.load %arg3[%c0_27, %c0_28] : memref<8x128xf32, #tpu.memory_space<vmem>>, vector<8x128xf32>
    %cst_29 = arith.constant 9.99999997E-7 : f32
    %cst_30 = arith.constant 0.999998986 : f32
    %37 = vector.broadcast %cst_29 : f32 to vector<8x128xf32>
    %38 = arith.maximumf %37, %36 : vector<8x128xf32>
    %39 = vector.broadcast %cst_30 : f32 to vector<8x128xf32>
    %40 = arith.minimumf %39, %38 : vector<8x128xf32>
    %41 = math.log %40 : vector<8x128xf32>
    %cst_31 = arith.constant 1.000000e+00 : f32
    %42 = vector.broadcast %cst_31 : f32 to vector<8x128xf32>
    %43 = arith.subf %42, %40 : vector<8x128xf32>
    %44 = math.log %43 : vector<8x128xf32>
    %45 = arith.subf %41, %44 : vector<8x128xf32>
    %46 = arith.addf %29, %45 : vector<8x128xf32>
    %cst_32 = arith.constant 0.000000e+00 : f32
    %47 = vector.broadcast %cst_32 : f32 to vector<8x128xf32>
    %48 = arith.cmpf ogt, %46, %47 : vector<8x128xf32>
    %49 = arith.extui %48 : vector<8x128xi1> to vector<8x128xi32>
    %50 = arith.sitofp %49 : vector<8x128xi32> to vector<8x128xf32>
    %c0_33 = arith.constant 0 : index
    %c0_34 = arith.constant 0 : index
    %51 = vector.load %arg11[%c0_33, %c0_34] : memref<8x128xf32, #tpu.memory_space<vmem>>, vector<8x128xf32>
    tpu.vector_store %arg11[%c0_33, %c0_34], %50 {strides = array<i32>} : memref<8x128xf32, #tpu.memory_space<vmem>>, vector<8x128xf32>,
    return
  }
  func.func @transform_0(%arg0: i32) -> (i32, i32) {
    %c0_i32 = arith.constant 0 : i32
    %c0_i32_0 = arith.constant 0 : i32
    return %arg0, %c0_i32 : i32, i32
  }
  func.func @transform_1(%arg0: i32) -> (i32, i32) {
    %c0_i32 = arith.constant 0 : i32
    %c0_i32_0 = arith.constant 0 : i32
    return %arg0, %c0_i32 : i32, i32
  }
  func.func @transform_2(%arg0: i32) -> (i32, i32) {
    %c0_i32 = arith.constant 0 : i32
    %c0_i32_0 = arith.constant 0 : i32
    return %arg0, %c0_i32 : i32, i32
  }
  func.func @transform_3(%arg0: i32) -> (i32, i32) {
    %c0_i32 = arith.constant 0 : i32
    %c0_i32_0 = arith.constant 0 : i32
    %c0_i32_1 = arith.constant 0 : i32
    return %c0_i32, %c0_i32_0 : i32, i32
  }
  func.func @transform_4(%arg0: i32) -> (i32, i32) {
    %c0_i32 = arith.constant 0 : i32
    %c0_i32_0 = arith.constant 0 : i32
    %c0_i32_1 = arith.constant 0 : i32
    return %c0_i32, %c0_i32_0 : i32, i32
  }
  func.func @transform_5(%arg0: i32) -> (i32, i32) {
    %c0_i32 = arith.constant 0 : i32
    %c0_i32_0 = arith.constant 0 : i32
    %c0_i32_1 = arith.constant 0 : i32
    return %c0_i32, %c0_i32_0 : i32, i32
  }
  func.func @transform_6(%arg0: i32) -> (i32, i32) {
    %c0_i32 = arith.constant 0 : i32
    %c0_i32_0 = arith.constant 0 : i32
    %c0_i32_1 = arith.constant 0 : i32
    return %c0_i32, %c0_i32_0 : i32, i32
  }
  func.func @transform_7(%arg0: i32) -> (i32, i32) {
    %c0_i32 = arith.constant 0 : i32
    %c0_i32_0 = arith.constant 0 : i32
    %c0_i32_1 = arith.constant 0 : i32
    return %c0_i32, %c0_i32_0 : i32, i32
  }
  func.func @transform_8(%arg0: i32) -> (i32, i32) {
    %c0_i32 = arith.constant 0 : i32
    %c0_i32_0 = arith.constant 0 : i32
    %c0_i32_1 = arith.constant 0 : i32
    return %c0_i32, %c0_i32_0 : i32, i32
  }
  func.func @transform_9(%arg0: i32) -> (i32, i32) {
    %c0_i32 = arith.constant 0 : i32
    %c0_i32_0 = arith.constant 0 : i32
    %c0_i32_1 = arith.constant 0 : i32
    return %c0_i32, %c0_i32_0 : i32, i32
  }
  func.func @transform_10(%arg0: i32) -> (i32, i32) {
    %c0_i32 = arith.constant 0 : i32
    %c0_i32_0 = arith.constant 0 : i32
    return %arg0, %c0_i32 : i32, i32
  }
  func.func @transform_11(%arg0: i32) -> (i32, i32) {
    %c0_i32 = arith.constant 0 : i32
    %c0_i32_0 = arith.constant 0 : i32
    return %arg0, %c0_i32 : i32, i32
  }
}

</mosaic_0001>

<bundles_post_ra>
// kernel: tpu_custom_call.1
= control target key start
LH: loop header
LB: loop body
LE: loop exit
PB: predicated region body
PF: predicated region fallthrough
CT: control target
= control target key end

     0   :  { %17 = vsyncpa [#allocation3], 0  ;;  %s1055_s0 = inlined_call_operand.hbm [shape: f32[8,8], index: 0, kind: input, shape index: {}]   ;;  %s1056_s1 = inlined_call_operand.vmem [shape: f32[8,4], index: 1, kind: input, shape index: {}]   ;;  %s1057_s2 = inlined_call_operand.hbm [shape: f32[8,128], index: 2, kind: input, shape index: {}]   ;;  %s1058_s3 = inlined_call_operand.vmem [shape: f32[8,256], index: 3, kind: input, shape index: {}]   ;;  %s1059_s4 = inlined_call_operand.vmem [shape: f32[4,256], index: 4, kind: input, shape index: {}]   ;;  %s1060_s5 = inlined_call_operand.vmem [shape: f32[1,256], index: 5, kind: input, shape index: {}]   ;;  %s1061_s6 = inlined_call_operand.hbm [shape: f32[256,256], index: 6, kind: input, shape index: {}]   ;;  %s1062_s7 = inlined_call_operand.vmem [shape: f32[1,256], index: 7, kind: input, shape index: {}]   ;;  %s1063_s8 = inlined_call_operand.hbm [shape: f32[256,128], index: 8, kind: input, shape index: {}]   ;;  %s1064_s9 = inlined_call_operand.vmem [shape: f32[1,128], index: 9, kind: input, shape index: {}]   ;;  %s1065_s10 = inlined_call_operand.hbm [shape: f32[8,128], index: 10, kind: output, shape index: {0}]   ;;  %s1066_s11 = inlined_call_operand.hbm [shape: f32[8,128], index: 11, kind: output, shape index: {1}]  }
   0x1   :  { %18 = vsyncpa [#allocation6], 0 }
   0x2   :  { %19 = vsyncpa [#allocation9], 0 }
   0x3   :  { %20 = vsyncpa [#allocation4], 0 }
   0x4   :  { %21 = vsyncpa [#allocation12], 0  ;;  %s888_s17 = smov [#allocation5]   ;;  %s889_s19 = smov [#allocation2]  }
   0x5   :  { %s40_s18 = sshll.u32 %s888_s17, 4  ;;  %s28_s20 = sshll.u32 %s889_s19, 4  ;;  %s41_s18 = int_to_ptr.vmem [resolvable:$true] %s40_s18  ;;  %s29_s20 = int_to_ptr.vmem [resolvable:$true] %s28_s20 }
   0x6   :  { %s746_s23 = scalar_lea.hbm %s1057_s2, 128 }
   0x7   :  { %p747_p0 = scmp.ne.s32.totalorder %s1057_s2, %s746_s23  ;;  %p750_p1 = scmp.lt.u32.totalorder %s746_s23, %s1057_s2 }
   0x9   :  { %p752_p2 = pnand %p750_p1, %p747_p0 }
   0xb   :  { %755 = shalt.err (!%p752_p2)
}
   0xc   :  { %s756_s28 = scalar_lea.vmem %s41_s18, 128  ;;  %p761_p4 = scmp.lt.s32.totalorder %s41_s18, %s41_s18 }
   0xd   :  { %p757_p3 = scmp.ne.s32.totalorder %s41_s18, %s756_s28  ;;  %p762_p5 = scmp.lt.s32.totalorder %s756_s28, %s756_s28 }
   0xf   :  { %p763_p6 = por %p762_p5, %p761_p4 }
  0x11   :  { %p764_p7 = pnand %p763_p6, %p757_p3 }
  0x13   :  { %767 = shalt.err (!%p764_p7)
}
  0x14   :  { %43 = dma.hbm_to_vmem [thread:$0]  %s1057_s2, 128, %s41_s18, [#allocation6]  }
  0x15   :  { %s768_s14 = scalar_lea.hbm %s1055_s0, 128 }
  0x16   :  { %p769_p8 = scmp.ne.s32.totalorder %s1055_s0, %s768_s14  ;;  %p772_p9 = scmp.lt.u32.totalorder %s768_s14, %s1055_s0 }
  0x18   :  { %p774_p10 = pnand %p772_p9, %p769_p8 }
  0x1a   :  { %777 = shalt.err (!%p774_p10)
}
  0x1b   :  { %s778_s21 = scalar_lea.vmem %s29_s20, 128  ;;  %p783_p12 = scmp.lt.s32.totalorder %s29_s20, %s29_s20 }
  0x1c   :  { %p779_p11 = scmp.ne.s32.totalorder %s29_s20, %s778_s21  ;;  %p784_p13 = scmp.lt.s32.totalorder %s778_s21, %s778_s21 }
  0x1e   :  { %p785_p0 = por %p784_p13, %p783_p12 }
  0x20   :  { %p786_p1 = pnand %p785_p0, %p779_p11 }
  0x22   :  { %789 = shalt.err (!%p786_p1)
}
  0x23   :  { %31 = dma.hbm_to_vmem [thread:$0]  %s1055_s0, 128, %s29_s20, [#allocation3]  }
  0x24   :  { %s890_s22 = smov [#allocation7]   ;;  %s790_s26 = scalar_lea.hbm %s1061_s6, 8192 }
  0x25   :  { %s55_s23 = sshll.u32 %s890_s22, 4  ;;  %p791_p2 = scmp.ne.s32.totalorder %s1061_s6, %s790_s26  ;;  %s56_s23 = int_to_ptr.vmem [resolvable:$true] %s55_s23 }
  0x26   :  { %p794_p3 = scmp.lt.u32.totalorder %s790_s26, %s1061_s6 }
  0x28   :  { %p796_p4 = pnand %p794_p3, %p791_p2 }
  0x2a   :  { %799 = shalt.err (!%p796_p4)
}
  0x2b   :  { %s800_s12 = scalar_lea.vmem %s56_s23, 8192  ;;  %p805_p6 = scmp.lt.s32.totalorder %s56_s23, %s56_s23 }
  0x2c   :  { %p801_p5 = scmp.ne.s32.totalorder %s56_s23, %s800_s12  ;;  %p806_p7 = scmp.lt.s32.totalorder %s800_s12, %s800_s12 }
  0x2e   :  { %p807_p8 = por %p806_p7, %p805_p6 }
  0x30   :  { %p808_p9 = pnand %p807_p8, %p801_p5 }
  0x32   :  { %811 = shalt.err (!%p808_p9)
}
  0x33   :  { %s891_s0 = smov 256   ;;  %s892_s20 = smov 16  }
  0x34   :  { %61 = dma.hbm_to_vmem [thread:$0]  %s1061_s6, 8192, %s56_s23, [#allocation6], %s891_s0, %s891_s0, %s892_s20  }
  0x35   :  { %s893_s15 = smov [#allocation8]   ;;  %s812_s21 = scalar_lea.hbm %s1063_s8, 4096 }
  0x36   :  { %s69_s16 = sshll.u32 %s893_s15, 4  ;;  %p813_p10 = scmp.ne.s32.totalorder %s1063_s8, %s812_s21  ;;  %s70_s16 = int_to_ptr.vmem [resolvable:$true] %s69_s16 }
  0x37   :  { %p816_p11 = scmp.lt.u32.totalorder %s812_s21, %s1063_s8 }
  0x39   :  { %p818_p12 = pnand %p816_p11, %p813_p10 }
  0x3b   :  { %821 = shalt.err (!%p818_p12)
}
  0x3c   :  { %s822_s25 = scalar_lea.vmem %s70_s16, 4096  ;;  %p827_p0 = scmp.lt.s32.totalorder %s70_s16, %s70_s16 }
  0x3d   :  { %p823_p13 = scmp.ne.s32.totalorder %s70_s16, %s822_s25  ;;  %p828_p1 = scmp.lt.s32.totalorder %s822_s25, %s822_s25 }
  0x3f   :  { %p829_p2 = por %p828_p1, %p827_p0 }
  0x41   :  { %p830_p3 = pnand %p829_p2, %p823_p13 }
  0x43   :  { %833 = shalt.err (!%p830_p3)
}
  0x44   :  { %s894_s6 = smov 128   ;;  %s895_s23 = smov 8  }
  0x45   :  { %75 = dma.hbm_to_vmem [thread:$0]  %s1063_s8, 4096, %s70_s16, [#allocation9], %s894_s6, %s894_s6, %s895_s23  }
  0x46   :  { %878 = dma.done.wait [#allocation3], 128  }
  0x47   :  { %879 = vsyncadd [#allocation3], 4294967168 }
  0x48   :  { %880 = dma.done.wait [#allocation6], 8320  }
  0x49   :  { %881 = vsyncadd [#allocation6], 4294958976 }
  0x4a   :  { %882 = dma.done.wait [#allocation9], 4096  }
  0x4b   :  { %883 = vsyncadd [#allocation9], 4294963200  ;;  %v896_v0 = vmov 0.0   ;;  %v94_v1 = vld [vmem:[%s1059_s4] sm:$0xff]  ;;  %vm101_vm0 = vcmask 1043456   ;;  %v92_v4 = vld [vmem:[%s1058_s3 + $0x8] sm:$0xff] }
  0x4c   :  { %170 = vmatprep.mubr.f32.mxu0 %v896_v0  ;;  %v96_v2 = vcombine.high %v94_v1, %v94_v1  ;;  %v93_v3 = vld [vmem:[%s1056_s1] sm:$0xff]  ;;  %v273_v5 = vld [vmem:[#allocation7 + $0x8] sm:$0xff]  ;;  %vm97_vm1 = vcmask 31744   ;;  %v275_v6 = vld [vmem:[#allocation7 + $0x18] sm:$0xff]  ;;  %vm177_vm2 = vcmask 64512   ;;  %s897_s15 = smov [#allocation10]  }
  0x4d   :  { %v272_v7 = vld [vmem:[#allocation7] sm:$0xff]  ;;  %v274_v8 = vld [vmem:[#allocation7 + $0x10] sm:$0xff]  ;;  %v628_v10 = vpack.c.bf16 %v275_v6, %v273_v5  ;;  %v277_v11 = vld [vmem:[#allocation7 + $0x28] sm:$0xff]  ;;  %s561_s16 = sshll.u32 %s897_s15, 4  ;;  %s562_s16 = int_to_ptr.vmem [resolvable:$true] %s561_s16 }
  0x4e   :  { %586 = vmatprep.subr.msk.mxu0 %vm101_vm0, %v96_v2  ;;  %v91_v9 = vld [vmem:[%s1058_s3] sm:$0xff]  ;;  %v279_v12 = vld [vmem:[#allocation7 + $0x38] sm:$0xff]  ;;  %v630_v13 = vpack.c.bf16 %v274_v8, %v272_v7  ;;  %v276_v15 = vld [vmem:[#allocation7 + $0x20] sm:$0xff]  ;;  %s834_s17 = scalar_lea.vmem %s562_s16, 128  ;;  %p839_p5 = scmp.lt.s32.totalorder %s562_s16, %s562_s16 }
  0x4f   :  { %587 = vmatpush1.msk.msra.mxu0 %vm101_vm0, %v94_v1  ;;  %v632_v14 = vpack.c.bf16 %v279_v12, %v277_v11  ;;  %v278_v16 = vld [vmem:[#allocation7 + $0x30] sm:$0xff]  ;;  %v281_v17 = vld [vmem:[#allocation7 + $0x48] sm:$0xff]  ;;  %v283_v18 = vld [vmem:[#allocation7 + $0x58] sm:$0xff]  ;;  %629 = vmatprep.subr.bf16.mxu1 %v628_v10  ;;  %p835_p4 = scmp.ne.s32.totalorder %s562_s16, %s834_s17  ;;  %p840_p6 = scmp.lt.s32.totalorder %s834_s17, %s834_s17 }
  0x50   :  { %588 = vmatmul.mubr.msk.f32.vlgmr.msra.gmra.mrb[0].mxu0 %vm97_vm1, %v93_v3  ;;  %181 = vmatprep.subr.mxu0 %v92_v4  ;;  %v634_v19 = vpack.c.bf16 %v278_v16, %v276_v15  ;;  %v636_v20 = vpack.c.bf16 %v283_v18, %v281_v17  ;;  %v280_v21 = vld [vmem:[#allocation7 + $0x40] sm:$0xff]  ;;  %v282_v22 = vld [vmem:[#allocation7 + $0x50] sm:$0xff]  ;;  %v285_v24 = vld [vmem:[#allocation7 + $0x68] sm:$0xff] }
  0x51   :  { %182 = vmatpush1.msra.mxu0 %v91_v9  ;;  %245 = vmatprep.mubr.f32.mxu0 %v896_v0  ;;  %v90_v23 = vld [vmem:[#allocation2] sm:$0xff]  ;;  %v287_v25 = vld [vmem:[#allocation7 + $0x78] sm:$0xff]  ;;  %v638_v26 = vpack.c.bf16 %v282_v22, %v280_v21  ;;  %v284_v28 = vld [vmem:[#allocation7 + $0x60] sm:$0xff]  ;;  %p841_p7 = por %p840_p6, %p839_p5 }
  0x52   :  { %631 = vmatpush1.bf16.msra.mxu1 %v630_v13  ;;  %v640_v27 = vpack.c.bf16 %v287_v25, %v285_v24  ;;  %v286_v29 = vld [vmem:[#allocation7 + $0x70] sm:$0xff]  ;;  %v289_v30 = vld [vmem:[#allocation7 + $0x88] sm:$0xff]  ;;  %v291_v31 = vld [vmem:[#allocation7 + $0x98] sm:$0xff] }
  0x53   :  { %633 = vmatprep.subr.bf16.mxu1 %v632_v14  ;;  %v642_v32 = vpack.c.bf16 %v286_v29, %v284_v28  ;;  %v644_v33 = vpack.c.bf16 %v291_v31, %v289_v30  ;;  %v288_v34 = vld [vmem:[#allocation7 + $0x80] sm:$0xff]  ;;  %v290_v35 = vld [vmem:[#allocation7 + $0x90] sm:$0xff]  ;;  %v293_v36 = vld [vmem:[#allocation7 + $0xa8] sm:$0xff]  ;;  %p842_p8 = pnand %p841_p7, %p835_p4 }
  0x54   :  { %v295_v37 = vld [vmem:[#allocation7 + $0xb8] sm:$0xff]  ;;  %v646_v38 = vpack.c.bf16 %v290_v35, %v288_v34  ;;  %v292_v40 = vld [vmem:[#allocation7 + $0xa0] sm:$0xff]  ;;  %v294_v41 = vld [vmem:[#allocation7 + $0xb0] sm:$0xff] }
  0x55   :  { %v648_v39 = vpack.c.bf16 %v295_v37, %v293_v36  ;;  %v297_v42 = vld [vmem:[#allocation7 + $0xc8] sm:$0xff]  ;;  %v299_v43 = vld [vmem:[#allocation7 + $0xd8] sm:$0xff]  ;;  %v650_v44 = vpack.c.bf16 %v294_v41, %v292_v40  ;;  %v296_v46 = vld [vmem:[#allocation7 + $0xc0] sm:$0xff] }
  0x56   :  { %635 = vmatpush1.bf16.msra.mxu1 %v634_v19  ;;  %v652_v45 = vpack.c.bf16 %v299_v43, %v297_v42  ;;  %v298_v47 = vld [vmem:[#allocation7 + $0xd0] sm:$0xff]  ;;  %v301_v48 = vld [vmem:[#allocation7 + $0xe8] sm:$0xff]  ;;  %v303_v49 = vld [vmem:[#allocation7 + $0xf8] sm:$0xff] }
  0x57   :  { %637 = vmatprep.subr.bf16.mxu1 %v636_v20  ;;  %v654_v50 = vpack.c.bf16 %v298_v47, %v296_v46  ;;  %v656_v51 = vpack.c.bf16 %v303_v49, %v301_v48  ;;  %v300_v52 = vld [vmem:[#allocation7 + $0xe0] sm:$0xff]  ;;  %v302_v53 = vld [vmem:[#allocation7 + $0xf0] sm:$0xff]  ;;  %v305_v54 = vld [vmem:[#allocation7 + $0x108] sm:$0xff] }
  0x58   :  { %589 = vmatmul.mubr.msk.f32.vlgmr.msra.gmra.mrb[0].mxu0 %vm177_vm2, %v90_v23  ;;  %v307_v55 = vld [vmem:[#allocation7 + $0x118] sm:$0xff]  ;;  %v658_v56 = vpack.c.bf16 %v302_v53, %v300_v52  ;;  %v304_v58 = vld [vmem:[#allocation7 + $0x100] sm:$0xff]  ;;  %v306_v59 = vld [vmem:[#allocation7 + $0x110] sm:$0xff] }
  0x59   :  { %v660_v57 = vpack.c.bf16 %v307_v55, %v305_v54  ;;  %v309_v60 = vld [vmem:[#allocation7 + $0x128] sm:$0xff]  ;;  %v311_v61 = vld [vmem:[#allocation7 + $0x138] sm:$0xff]  ;;  %v662_v62 = vpack.c.bf16 %v306_v59, %v304_v58  ;;  %v308_v1 = vld [vmem:[#allocation7 + $0x120] sm:$0xff] }
  0x5a   :  { %639 = vmatpush1.bf16.msra.mxu1 %v638_v26  ;;  %v664_v63 = vpack.c.bf16 %v311_v61, %v309_v60  ;;  %v310_v2 = vld [vmem:[#allocation7 + $0x130] sm:$0xff]  ;;  %v313_v3 = vld [vmem:[#allocation7 + $0x148] sm:$0xff]  ;;  %v315_v4 = vld [vmem:[#allocation7 + $0x158] sm:$0xff] }
  0x5b   :  { %641 = vmatprep.subr.bf16.mxu1 %v640_v27  ;;  %v666_v5 = vpack.c.bf16 %v310_v2, %v308_v1  ;;  %v668_v6 = vpack.c.bf16 %v315_v4, %v313_v3  ;;  %v312_v7 = vld [vmem:[#allocation7 + $0x140] sm:$0xff]  ;;  %v314_v8 = vld [vmem:[#allocation7 + $0x150] sm:$0xff]  ;;  %v317_v9 = vld [vmem:[#allocation7 + $0x168] sm:$0xff] }
  0x5c   :  { %v319_v10 = vld [vmem:[#allocation7 + $0x178] sm:$0xff]  ;;  %v670_v11 = vpack.c.bf16 %v314_v8, %v312_v7  ;;  %v316_v13 = vld [vmem:[#allocation7 + $0x160] sm:$0xff]  ;;  %v318_v14 = vld [vmem:[#allocation7 + $0x170] sm:$0xff] }
  0x5d   :  { %v672_v12 = vpack.c.bf16 %v319_v10, %v317_v9  ;;  %v321_v15 = vld [vmem:[#allocation7 + $0x188] sm:$0xff]  ;;  %v323_v16 = vld [vmem:[#allocation7 + $0x198] sm:$0xff]  ;;  %v674_v17 = vpack.c.bf16 %v318_v14, %v316_v13  ;;  %v320_v19 = vld [vmem:[#allocation7 + $0x180] sm:$0xff]  ;;  %v254_v13 = vlaneseq }
  0x5e   :  { %643 = vmatpush1.bf16.msra.mxu1 %v642_v32  ;;  %v676_v18 = vpack.c.bf16 %v323_v16, %v321_v15  ;;  %v322_v20 = vld [vmem:[#allocation7 + $0x190] sm:$0xff]  ;;  %v325_v21 = vld [vmem:[#allocation7 + $0x1a8] sm:$0xff]  ;;  %v327_v22 = vld [vmem:[#allocation7 + $0x1b8] sm:$0xff] }
  0x5f   :  { %645 = vmatprep.subr.bf16.mxu1 %v644_v33  ;;  %v678_v23 = vpack.c.bf16 %v322_v20, %v320_v19  ;;  %v680_v24 = vpack.c.bf16 %v327_v22, %v325_v21  ;;  %v324_v25 = vld [vmem:[#allocation7 + $0x1a0] sm:$0xff]  ;;  %v326_v26 = vld [vmem:[#allocation7 + $0x1b0] sm:$0xff]  ;;  %v329_v28 = vld [vmem:[#allocation7 + $0x1c8] sm:$0xff]  ;;  %v255_v14 = vshrl.u32 %v254_v13, 7 }
  0x60   :  { %v682_v27 = vpack.c.bf16 %v326_v26, %v324_v25  ;;  %v331_v29 = vld [vmem:[#allocation7 + $0x1d8] sm:$0xff]  ;;  %v328_v31 = vld [vmem:[#allocation7 + $0x1c0] sm:$0xff]  ;;  %v330_v32 = vld [vmem:[#allocation7 + $0x1d0] sm:$0xff] }
  0x61   :  { %v684_v30 = vpack.c.bf16 %v331_v29, %v329_v28  ;;  %v686_v33 = vpack.c.bf16 %v330_v32, %v328_v31  ;;  %v333_v34 = vld [vmem:[#allocation7 + $0x1e8] sm:$0xff]  ;;  %v335_v35 = vld [vmem:[#allocation7 + $0x1f8] sm:$0xff]  ;;  %v332_v37 = vld [vmem:[#allocation7 + $0x1e0] sm:$0xff]  ;;  %v256_v15 = vsub.s32 0, %v255_v14 }
  0x62   :  { %647 = vmatpush1.bf16.msra.mxu1 %v646_v38  ;;  %v688_v36 = vpack.c.bf16 %v335_v35, %v333_v34  ;;  %v334_v38 = vld [vmem:[#allocation7 + $0x1f0] sm:$0xff]  ;;  %v441_v40 = vld [vmem:[#allocation8 + $0x80] sm:$0xff]  ;;  %v442_v41 = vld [vmem:[#allocation8 + $0x88] sm:$0xff] }
  0x63   :  { %649 = vmatprep.subr.bf16.mxu1 %v648_v39  ;;  %v690_v39 = vpack.c.bf16 %v334_v38, %v332_v37  ;;  %v425_v42 = vld [vmem:[#allocation8] sm:$0xff]  ;;  %v692_v43 = vpack.c.bf16 %v442_v41, %v441_v40  ;;  %v444_v46 = vld [vmem:[#allocation8 + $0x98] sm:$0xff]  ;;  %v427_v49 = vld [vmem:[#allocation8 + $0x10] sm:$0xff] }
  0x64   :  { %v446_v52 = vld [vmem:[#allocation8 + $0xa8] sm:$0xff]  ;;  %v429_v55 = vld [vmem:[#allocation8 + $0x20] sm:$0xff]  ;;  %v448_v58 = vld [vmem:[#allocation8 + $0xb8] sm:$0xff] }
  0x65   :  { %693 = vmatprep.subr.bf16.mxu0 %v692_v43  ;;  %v431_v61 = vld [vmem:[#allocation8 + $0x30] sm:$0xff]  ;;  %v450_v1 = vld [vmem:[#allocation8 + $0xc8] sm:$0xff]  ;;  %v433_v4 = vld [vmem:[#allocation8 + $0x40] sm:$0xff] }
  0x66   :  { %651 = vmatpush1.bf16.msra.mxu1 %v650_v44  ;;  %v426_v44 = vld [vmem:[#allocation8 + $0x8] sm:$0xff]  ;;  %v452_v7 = vld [vmem:[#allocation8 + $0xd8] sm:$0xff]  ;;  %v435_v10 = vld [vmem:[#allocation8 + $0x50] sm:$0xff] }
  0x67   :  { %653 = vmatprep.subr.bf16.mxu1 %v652_v45  ;;  %v443_v45 = vld [vmem:[#allocation8 + $0x90] sm:$0xff]  ;;  %v694_v47 = vpack.c.bf16 %v426_v44, %v425_v42  ;;  %v453_v28 = vld [vmem:[#allocation8 + $0xe0] sm:$0xff]  ;;  %v454_v29 = vld [vmem:[#allocation8 + $0xe8] sm:$0xff] }
  0x68   :  { %v696_v48 = vpack.c.bf16 %v444_v46, %v443_v45  ;;  %v252_v16 = vld [vmem:[%s1060_s5] sm:$0x3]  ;;  %v437_v31 = vld [vmem:[#allocation8 + $0x60] sm:$0xff]  ;;  %v438_v32 = vld [vmem:[#allocation8 + $0x68] sm:$0xff] }
  0x69   :  { %695 = vmatpush3.bf16.msra.mxu0 %v694_v47  ;;  %v455_v34 = vld [vmem:[#allocation8 + $0xf0] sm:$0xff]  ;;  %v456_v35 = vld [vmem:[#allocation8 + $0xf8] sm:$0xff] }
  0x6a   :  { %655 = vmatpush1.bf16.msra.mxu1 %v654_v50  ;;  %v428_v50 = vld [vmem:[#allocation8 + $0x18] sm:$0xff]  ;;  %697 = vmatprep.subr.bf16.mxu0 %v696_v48  ;;  %v439_v37 = vld [vmem:[#allocation8 + $0x70] sm:$0xff] }
  0x6b   :  { %657 = vmatprep.subr.bf16.mxu1 %v656_v51  ;;  %v445_v51 = vld [vmem:[#allocation8 + $0xa0] sm:$0xff]  ;;  %v698_v53 = vpack.c.bf16 %v428_v50, %v427_v49  ;;  %v440_v38 = vld [vmem:[#allocation8 + $0x78] sm:$0xff]  ;;  %v336_v40 = vld [vmem:[%s1062_s7] sm:$0x3] }
  0x6c   :  { %v700_v54 = vpack.c.bf16 %v446_v52, %v445_v51  ;;  %v341_v41 = vrot.slane %v336_v40, %v256_v15  ;;  %v541_v51 = vld [vmem:[#allocation5] sm:$0xff] }
  0x6d   :  { %699 = vmatpush3.bf16.msra.mxu0 %v698_v53  ;;  %v542_v52 = vmax.f32 %v541_v51, 1e-06 }
  0x6e   :  { %659 = vmatpush1.bf16.msra.mxu1 %v658_v56  ;;  %v430_v56 = vld [vmem:[#allocation8 + $0x28] sm:$0xff]  ;;  %701 = vmatprep.subr.bf16.mxu0 %v700_v54 }
  0x6f   :  { %661 = vmatprep.subr.bf16.mxu1 %v660_v57  ;;  %v447_v57 = vld [vmem:[#allocation8 + $0xb0] sm:$0xff]  ;;  %v702_v59 = vpack.c.bf16 %v430_v56, %v429_v55  ;;  %v543_v53 = vmin.f32 %v542_v52, 0.999999 }
  0x70   :  { %v704_v60 = vpack.c.bf16 %v448_v58, %v447_v57 }
  0x71   :  { %703 = vmatpush3.bf16.msra.mxu0 %v702_v59  ;;  %v546_v54 = vsub.f32 1.0, %v543_v53  ;;  %738 = vlog2.f32 %v543_v53 }
  0x72   :  { %663 = vmatpush1.bf16.msra.mxu1 %v662_v62  ;;  %v432_v62 = vld [vmem:[#allocation8 + $0x38] sm:$0xff]  ;;  %705 = vmatprep.subr.bf16.mxu0 %v704_v60  ;;  %v590_v60 = vld [vmem:[%s1064_s9] ss:$0 sm:$0xff] }
  0x73   :  { %665 = vmatprep.subr.bf16.mxu1 %v664_v63  ;;  %v449_v63 = vld [vmem:[#allocation8 + $0xc0] sm:$0xff]  ;;  %v706_v2 = vpack.c.bf16 %v432_v62, %v431_v61  ;;  %740 = vlog2.f32 %v546_v54 }
  0x74   :  { %v708_v3 = vpack.c.bf16 %v450_v1, %v449_v63 }
  0x75   :  { %707 = vmatpush3.bf16.msra.mxu0 %v706_v2 }
  0x76   :  { %667 = vmatpush1.bf16.msra.mxu1 %v666_v5  ;;  %v434_v5 = vld [vmem:[#allocation8 + $0x48] sm:$0xff]  ;;  %709 = vmatprep.subr.bf16.mxu0 %v708_v3 }
  0x77   :  { %669 = vmatprep.subr.bf16.mxu1 %v668_v6  ;;  %v451_v6 = vld [vmem:[#allocation8 + $0xd0] sm:$0xff]  ;;  %v710_v8 = vpack.c.bf16 %v434_v5, %v433_v4 }
  0x78   :  { %v712_v9 = vpack.c.bf16 %v452_v7, %v451_v6 }
  0x79   :  { %711 = vmatpush3.bf16.msra.mxu0 %v710_v8 }
  0x7a   :  { %671 = vmatpush1.bf16.msra.mxu1 %v670_v11  ;;  %v436_v11 = vld [vmem:[#allocation8 + $0x58] sm:$0xff]  ;;  %713 = vmatprep.subr.bf16.mxu0 %v712_v9 }
  0x7b   :  { %673 = vmatprep.subr.bf16.mxu1 %v672_v12  ;;  %v714_v12 = vpack.c.bf16 %v436_v11, %v435_v10  ;;  %v739_v55 = vpop.eup %738 }
  0x7c   :  { %v545_v57 = vmul.f32 0.6931472, %v739_v55 }
  0x7d   :  { %715 = vmatpush3.bf16.msra.mxu0 %v714_v12  ;;  %v741_v56 = vpop.eup %740 }
  0x7e   :  { %675 = vmatpush1.bf16.msra.mxu1 %v674_v17  ;;  %v260_v17 = vsub.s32 1, %v255_v14  ;;  %v548_v58 = vmul.f32 0.6931472, %v741_v56 }
  0x7f   :  { %677 = vmatprep.subr.bf16.mxu1 %v676_v18  ;;  %v257_v18 = vrot.slane %v252_v16, %v256_v15 }
  0x80   :  { %v261_v19 = vrot.slane %v252_v16, %v260_v17  ;;  %v345_v42 = vrot.slane %v336_v40, %v260_v17  ;;  %v549_v63 = vsub.f32 %v545_v57, %v548_v58 }
  0x82   :  { %679 = vmatpush1.bf16.msra.mxu1 %v678_v23 }
  0x83   :  { %681 = vmatprep.subr.bf16.mxu1 %v680_v24 }
  0x86   :  { %683 = vmatpush1.bf16.msra.mxu1 %v682_v27 }
  0x87   :  { %685 = vmatprep.subr.bf16.mxu1 %v684_v30  ;;  %v716_v30 = vpack.c.bf16 %v454_v29, %v453_v28 }
  0x89   :  { %717 = vmatprep.subr.bf16.mxu0 %v716_v30 }
  0x8a   :  { %687 = vmatpush1.bf16.msra.mxu1 %v686_v33  ;;  %v718_v33 = vpack.c.bf16 %v438_v32, %v437_v31 }
  0x8b   :  { %689 = vmatprep.subr.bf16.mxu1 %v688_v36  ;;  %v720_v36 = vpack.c.bf16 %v456_v35, %v455_v34 }
  0x8c   :  { %719 = vmatpush3.bf16.msra.mxu0 %v718_v33 }
  0x8d   :  { %721 = vmatprep.subr.bf16.mxu0 %v720_v36 }
  0x8e   :  { %691 = vmatpush1.bf16.msra.mxu1 %v690_v39  ;;  %v722_v39 = vpack.c.bf16 %v440_v38, %v439_v37 }
  0x90   :  { %723 = vmatpush3.bf16.msra.mxu0 %v722_v39 }
 0x12b   :  { %v247_v20 = vpop.f32.mrb[0].mxu0 }
 0x12c   :  { %v264_v21 = vadd.f32 %v257_v18, %v247_v20  ;;  %v249_v22 = vpop.f32.mrb[1].mxu0 }
 0x12d   :  { %v265_v23 = vadd.f32 %v261_v19, %v249_v22 }
 0x12e   :  { %v268_v24 = vmul.f32 0.01, %v264_v21  ;;  %vm266_vm4 = vcmp.gt.f32.partialorder %v264_v21, 0.0 }
 0x12f   :  { %vm267_vm3 = vcmp.gt.f32.partialorder %v265_v23, 0.0  ;;  %v269_v25 = vmul.f32 0.01, %v265_v23 }
 0x130   :  { %v270_v27 = vsel %vm266_vm4, %v264_v21, %v268_v24 }
 0x131   :  { %v271_v26 = vsel %vm267_vm3, %v265_v23, %v269_v25 }
 0x132   :  { %412 = vmatprep.mubr.f32.mxu1 %v271_v26 }
 0x133   :  { %413 = vmatmul.mubr.f32.vlgmr.msra.gmra.mrb[0].mxu1 %v270_v27 }
 0x206   :  { %v414_v43 = vpop.f32.mrb[0].mxu1 }
 0x207   :  { %v415_v44 = vadd.f32 %v414_v43, %v341_v41  ;;  %v416_v45 = vpop.f32.mrb[1].mxu1 }
 0x208   :  { %v417_v46 = vadd.f32 %v416_v45, %v345_v42 }
 0x209   :  { %v421_v47 = vmul.f32 0.01, %v415_v44  ;;  %vm419_vm5 = vcmp.gt.f32.partialorder %v415_v44, 0.0 }
 0x20a   :  { %v422_v48 = vmul.f32 0.01, %v417_v46  ;;  %vm420_vm6 = vcmp.gt.f32.partialorder %v417_v46, 0.0 }
 0x20b   :  { %v423_v50 = vsel %vm419_vm5, %v415_v44, %v421_v47 }
 0x20c   :  { %v424_v49 = vsel %vm420_vm6, %v417_v46, %v422_v48 }
 0x20d   :  { %528 = vmatprep.mubr.f32.mxu0 %v424_v49 }
 0x20e   :  { %529 = vmatmul.mubr.f32.vlgmr.msra.gmra.mrb[2].mxu0 %v423_v50 }
 0x2e1   :  { %v625_v59 = vpop.f32.mrb[2].mxu0 }
 0x2e2   :  { %v626_v61 = vpop.f32.mrb[3].mxu0 }
 0x2e3   :  { %v627_v62 = vadd.f32 %v626_v61, %v625_v59 }
 0x2e5   :  { %v531_v1 = vadd.f32 %v627_v62, %v590_v60 }
 0x2e7   :  { %v591_v2 = vmul.f32 -1.442695, %v531_v1  ;;  %v550_v3 = vadd.f32 %v549_v63, %v531_v1 }
 0x2e9   :  { %742 = vpow2.f32 %v591_v2  ;;  %vm551_vm7 = vcmp.gt.f32.partialorder %v550_v3, 0.0 }
 0x2ea   :  { %v592_v4 = vsel %vm551_vm7, 1.0, %v896_v0 }
 0x2eb   :  { %554 = vst [vmem:[#allocation10] sm:$0xff] %v592_v4 }
 0x2ec   :  { %845 = shalt.err (!%p842_p8)
}
 0x2ed   :  { %s846_s21 = scalar_lea.hbm %s1065_s10, 128 }
 0x2ee   :  { %p847_p9 = scmp.ne.s32.totalorder %s1065_s10, %s846_s21  ;;  %p850_p10 = scmp.lt.u32.totalorder %s846_s21, %s1065_s10 }
 0x2f0   :  { %p852_p11 = pnand %p850_p10, %p847_p9 }
 0x2f2   :  { %855 = shalt.err (!%p852_p11)
}
 0x2f3   :  { %564 = dma.vmem_to_hbm [thread:$0]  %s562_s16, 128, %s1065_s10, [#allocation4]   ;;  %v743_v0 = vpop.eup %742 }
 0x2f4   :  { %v537_v5 = vadd.f32 1.0, %v743_v0  ;;  %s898_s23 = smov [#allocation11]  }
 0x2f5   :  { %s571_s26 = sshll.u32 %s898_s23, 4  ;;  %s572_s26 = int_to_ptr.vmem [resolvable:$true] %s571_s26 }
 0x2f6   :  { %744 = vrcp.f32 %v537_v5  ;;  %s856_s27 = scalar_lea.vmem %s572_s26, 128  ;;  %p861_p13 = scmp.lt.s32.totalorder %s572_s26, %s572_s26 }
 0x2f7   :  { %p857_p12 = scmp.ne.s32.totalorder %s572_s26, %s856_s27  ;;  %p862_p0 = scmp.lt.s32.totalorder %s856_s27, %s856_s27 }
 0x2f9   :  { %p863_p1 = por %p862_p0, %p861_p13 }
 0x2fb   :  { %p864_p2 = pnand %p863_p1, %p857_p12 }
 0x300   :  { %v745_v6 = vpop.eup %744 }
 0x301   :  { %540 = vst [vmem:[#allocation11] sm:$0xff] %v745_v6 }
 0x302   :  { %867 = shalt.err (!%p864_p2)
}
 0x303   :  { %s868_s30 = scalar_lea.hbm %s1066_s11, 128 }
 0x304   :  { %p869_p3 = scmp.ne.s32.totalorder %s1066_s11, %s868_s30  ;;  %p872_p4 = scmp.lt.u32.totalorder %s868_s30, %s1066_s11 }
 0x306   :  { %p874_p5 = pnand %p872_p4, %p869_p3 }
 0x308   :  { %877 = shalt.err (!%p874_p5)
}
 0x309   :  { %574 = dma.vmem_to_hbm [thread:$0]  %s572_s26, 128, %s1066_s11, [#allocation12]  }
 0x30a   :  { %884 = dma.done.wait [#allocation4], 128  }
 0x30b   :  { %885 = vsyncadd [#allocation4], 4294967168 }
 0x30c   :  { %886 = dma.done.wait [#allocation12], 128  }
 0x30d   :  { %887 = vsyncadd [#allocation12], 4294967168 }
 0x30e   :  { %581 = vsyncpa [#allocation3], 1 }
 0x30f   :  { %582 = vsyncpa [#allocation6], 1 }
 0x310   :  { %583 = vsyncpa [#allocation9], 1 }
 0x311   :  { %584 = vsyncpa [#allocation4], 1 }
 0x312   :  { %585 = vsyncpa [#allocation12], 1 }

</bundles_post_ra>
